<compile_context>
chip_gen: v7x
topology: tpu7x:2x2x1
jax: 0.10.0
libtpu: 0.0.40
codegen_flags: <defaults>
</compile_context>

<pallas_src>
import functools
import math

import jax
import jax.numpy as jnp
from jax.experimental import pallas as pl
from jax.experimental.pallas import tpu as pltpu


# ----------------------------------------------------------------------------- pe table (init)
def sinusoidal_table(max_len, d_model):
    """Exactly the buffer built in TimestepEmbedder.__init__ (sin on even cols, cos on odd)."""
    assert d_model % 2 == 0, "sinusoidal_table assumes even d_model"
    pos = jnp.arange(max_len, dtype=jnp.float32)[:, None]
    div = jnp.exp(jnp.arange(0, d_model, 2, dtype=jnp.float32) * (-math.log(10000.0) / d_model))
    pe = jnp.zeros((max_len, d_model), jnp.float32)
    pe = pe.at[:, 0::2].set(jnp.sin(pos * div))
    pe = pe.at[:, 1::2].set(jnp.cos(pos * div))
    return pe


# ----------------------------------------------------------------------------- per-row HBM DMA path
def _hbm_row_gather_kernel(ts_ref, nrows_ref, pe_hbm, out_ref, sems, *, rows_per_step):
    """Gather rows_per_step rows of pe (indices from SMEM) straight into the output tile.

    ts_ref   : SMEM int32[(padded B,)]       -- scalar-prefetched timestep indices
    nrows_ref: SMEM int32[(1,)]              -- true (unpadded) number of rows
    pe_hbm   : HBM  f32[(max_len, d_model)]  -- raw ref, one DMA per requested row
    out_ref  : VMEM f32[(rows_per_step, d_model)] output block (DMA target, no staging buf)
    sems     : DMA semaphores, one per row
    """
    base = pl.program_id(0) * rows_per_step
    nrows = nrows_ref[0]

    # Hoist all SMEM index reads before any .wait() (wait breaks SMEM sst->sld forwarding).
    idxs = [ts_ref[base + r] for r in range(rows_per_step)]

    # Issue all row DMAs back-to-back so they overlap ...
    for r in range(rows_per_step):
        @pl.when(base + r < nrows)
        def _issue(r=r):
            pltpu.make_async_copy(pe_hbm.at[pl.ds(idxs[r], 1), :],
                                  out_ref.at[pl.ds(r, 1), :],
                                  sems.at[r]).start()

    # ... then wait on each (same descriptor shape / same condition -> balanced sem counts).
    for r in range(rows_per_step):
        @pl.when(base + r < nrows)
        def _wait(r=r):
            pltpu.make_async_copy(pe_hbm.at[pl.ds(idxs[r], 1), :],
                                  out_ref.at[pl.ds(r, 1), :],
                                  sems.at[r]).wait()


# ----------------------------------------------------------------------------- bulk table-in-VMEM path
def _vmem_row_gather_kernel(ts_ref, nrows_ref, pe_vmem, out_ref, *, rows_per_step):
    """Whole pe table resident in VMEM (fetched once); gather rows with in-VMEM reads."""
    base = pl.program_id(0) * rows_per_step
    for r in range(rows_per_step):
        idx = ts_ref[base + r]                       # padded rows read pe[0]; sliced off later
        out_ref[pl.ds(r, 1), :] = pe_vmem[pl.ds(idx, 1), :]


# ----------------------------------------------------------------------------- wrapper
def timestep_embedder(pe, timesteps, *, bulk_threshold=64, vmem_budget_bytes=16 << 20):
    """forward(x) = pe[x].  timesteps: integer array (any shape); returns shape + (d_model,)."""
    max_len, d_model = pe.shape
    # Lane-dense output requirement; demo uses d_model=128.
    # TODO(synk): pad d_model to a multiple of 128 (and slice back) if it ever isn't.
    assert d_model % 128 == 0, "d_model must be a multiple of 128 for lane-dense output"

    orig_shape = timesteps.shape
    ts = jnp.clip(timesteps.reshape(-1).astype(jnp.int32), 0, max_len - 1)
    b = ts.shape[0]

    table_bytes = max_len * d_model * pe.dtype.itemsize
    # Bulk path: amortizes best on v7x (highest HBM BW), but must fit VMEM (v7x has 64 MiB
    # physical / 32 MiB scoped); 2x for the pipeline's double buffer.
    use_bulk = (b >= bulk_threshold) and (2 * table_bytes <= vmem_budget_bytes)

    if use_bulk:
        rows_per_step = min(128, ((b + 7) // 8) * 8)   # multiple of 8, capped unroll
    else:
        rows_per_step = 8

    n_steps = pl.cdiv(b, rows_per_step)
    b_pad = n_steps * rows_per_step
    ts = jnp.pad(ts, (0, b_pad - b))                   # padded indices -> 0 (guarded / sliced off)
    nrows = jnp.array([b], dtype=jnp.int32)

    out_spec = pl.BlockSpec((rows_per_step, d_model), lambda g, ts_ref, n_ref: (g, 0))

    if use_bulk:
        grid_spec = pltpu.PrefetchScalarGridSpec(
            num_scalar_prefetch=2,                                       # ts, nrows -> SMEM
            grid=(n_steps,),
            in_specs=[pl.BlockSpec((max_len, d_model),
                                   lambda g, ts_ref, n_ref: (0, 0))],    # table fetched once
            out_specs=out_spec,
            scratch_shapes=[],
        )
        kernel = functools.partial(_vmem_row_gather_kernel, rows_per_step=rows_per_step)
        compiler_params = pltpu.CompilerParams(dimension_semantics=("arbitrary",))
    else:
        grid_spec = pltpu.PrefetchScalarGridSpec(
            num_scalar_prefetch=2,                                       # ts, nrows -> SMEM
            grid=(n_steps,),
            in_specs=[pl.BlockSpec(memory_space=pl.ANY)],                # pe stays in HBM
            out_specs=out_spec,
            scratch_shapes=[pltpu.SemaphoreType.DMA((rows_per_step,))],
        )
        kernel = functools.partial(_hbm_row_gather_kernel, rows_per_step=rows_per_step)
        compiler_params = pltpu.CompilerParams(dimension_semantics=("parallel",))

    out = pl.pallas_call(
        kernel,
        grid_spec=grid_spec,
        out_shape=jax.ShapeDtypeStruct((b_pad, d_model), pe.dtype),
        compiler_params=compiler_params,
    )(ts, nrows, pe)

    return out[:b].reshape(orig_shape + (d_model,))


# ----------------------------------------------------------------------------- demo
if __name__ == "__main__":
    d_model, max_len = 128, 5000
    pe = sinusoidal_table(max_len, d_model)            # the register_buffer

    key = jax.random.PRNGKey(0)
    k_small, k_big = jax.random.split(key)

    fwd = jax.jit(timestep_embedder)

    # Small batch -> per-row HBM DMA gather path.
    B_small = 8
    ts_small = jax.random.randint(k_small, (B_small,), 0, 1000, dtype=jnp.int32)
    emb_small = fwd(pe, ts_small)
    jax.block_until_ready(emb_small)
    ref_small = pe[ts_small]
    assert emb_small.shape == (B_small, d_model)
    assert bool(jnp.all(jnp.isfinite(emb_small)))
    assert bool(jnp.allclose(emb_small, ref_small, atol=0.0, rtol=0.0))

    # Larger batch -> bulk table-in-VMEM gather path.
    B_big = 96
    ts_big = jax.random.randint(k_big, (B_big,), 0, max_len, dtype=jnp.int32)
    emb_big = fwd(pe, ts_big)
    jax.block_until_ready(emb_big)
    ref_big = pe[ts_big]
    assert emb_big.shape == (B_big, d_model)
    assert bool(jnp.all(jnp.isfinite(emb_big)))
    assert bool(jnp.allclose(emb_big, ref_big, atol=0.0, rtol=0.0))

    print("KERNEL_OK")
</pallas_src>

<mosaic_0001>
module attributes {stable_mosaic.version = 11 : i64} {
  func.func @_hbm_row_gather_kernel(%arg0: i32, %arg1: memref<8xi32, #tpu.memory_space<smem>>, %arg2: memref<1xi32, #tpu.memory_space<smem>>, %arg3: memref<5000x128xf32, #tpu.memory_space<any>>, %arg4: memref<8x128xf32, #tpu.memory_space<vmem>>, %arg5: memref<8x!tpu.dma_semaphore, #tpu.memory_space<semaphore_mem>>) attributes {dimension_semantics = [#tpu.dimension_semantics<parallel>], iteration_bounds = array<i64: 1>, scalar_prefetch = 2 : i64, scratch_operands = 1 : i64, tpu.core_type = #tpu.core_type<tc>, window_params = [{}, {transform_indices = @transform_1, window_bounds = array<i64: 8, 128>}]} {
    %c8_i32 = arith.constant 8 : i32
    %0 = arith.muli %arg0, %c8_i32 : i32
    %c0 = arith.constant 0 : index
    %1 = memref.load %arg2[%c0] : memref<1xi32, #tpu.memory_space<smem>>
    %c0_i32 = arith.constant 0 : i32
    %2 = arith.addi %0, %c0_i32 : i32
    %3 = arith.index_cast %2 : i32 to index
    %4 = memref.load %arg1[%3] : memref<8xi32, #tpu.memory_space<smem>>
    %c1_i32 = arith.constant 1 : i32
    %5 = arith.addi %0, %c1_i32 : i32
    %6 = arith.index_cast %5 : i32 to index
    %7 = memref.load %arg1[%6] : memref<8xi32, #tpu.memory_space<smem>>
    %c2_i32 = arith.constant 2 : i32
    %8 = arith.addi %0, %c2_i32 : i32
    %9 = arith.index_cast %8 : i32 to index
    %10 = memref.load %arg1[%9] : memref<8xi32, #tpu.memory_space<smem>>
    %c3_i32 = arith.constant 3 : i32
    %11 = arith.addi %0, %c3_i32 : i32
    %12 = arith.index_cast %11 : i32 to index
    %13 = memref.load %arg1[%12] : memref<8xi32, #tpu.memory_space<smem>>
    %c4_i32 = arith.constant 4 : i32
    %14 = arith.addi %0, %c4_i32 : i32
    %15 = arith.index_cast %14 : i32 to index
    %16 = memref.load %arg1[%15] : memref<8xi32, #tpu.memory_space<smem>>
    %c5_i32 = arith.constant 5 : i32
    %17 = arith.addi %0, %c5_i32 : i32
    %18 = arith.index_cast %17 : i32 to index
    %19 = memref.load %arg1[%18] : memref<8xi32, #tpu.memory_space<smem>>
    %c6_i32 = arith.constant 6 : i32
    %20 = arith.addi %0, %c6_i32 : i32
    %21 = arith.index_cast %20 : i32 to index
    %22 = memref.load %arg1[%21] : memref<8xi32, #tpu.memory_space<smem>>
    %c7_i32 = arith.constant 7 : i32
    %23 = arith.addi %0, %c7_i32 : i32
    %24 = arith.index_cast %23 : i32 to index
    %25 = memref.load %arg1[%24] : memref<8xi32, #tpu.memory_space<smem>>
    %c0_i32_0 = arith.constant 0 : i32
    %26 = arith.addi %0, %c0_i32_0 : i32
    %27 = arith.cmpi slt, %26, %1 : i32
    %28 = arith.extui %27 : i1 to i32
    %c0_i32_1 = arith.constant 0 : i32
    %29 = arith.cmpi ne, %28, %c0_i32_1 : i32
    scf.if %29 {
      %c0_i32_32 = arith.constant 0 : i32
      %c0_i32_33 = arith.constant 0 : i32
      %90 = tpu.memref_slice %arg3[%4, %c0_i32_33] : memref<5000x128xf32, #tpu.memory_space<any>> -> memref<1x128xf32, #tpu.memory_space<any>>
      %c0_i32_34 = arith.constant 0 : i32
      %c0_i32_35 = arith.constant 0 : i32
      %91 = tpu.memref_slice %arg4[%c0_i32_34, %c0_i32_35] : memref<8x128xf32, #tpu.memory_space<vmem>> -> memref<1x128xf32, #tpu.memory_space<vmem>>
      %92 = tpu.memref_slice %arg5[%c0_i32_32] : memref<8x!tpu.dma_semaphore, #tpu.memory_space<semaphore_mem>> -> memref<1x!tpu.dma_semaphore, #tpu.memory_space<semaphore_mem>>
      %93 = tpu.memref_squeeze %92 : memref<1x!tpu.dma_semaphore, #tpu.memory_space<semaphore_mem>> -> memref<!tpu.dma_semaphore, #tpu.memory_space<semaphore_mem>>
      tpu.enqueue_dma source(%90 : memref<1x128xf32, #tpu.memory_space<any>>) target(%91 : memref<1x128xf32, #tpu.memory_space<vmem>>) target_semaphore(%93 : memref<!tpu.dma_semaphore, #tpu.memory_space<semaphore_mem>>)
    } else {
    }
    %c1_i32_2 = arith.constant 1 : i32
    %30 = arith.addi %0, %c1_i32_2 : i32
    %31 = arith.cmpi slt, %30, %1 : i32
    %32 = arith.extui %31 : i1 to i32
    %c0_i32_3 = arith.constant 0 : i32
    %33 = arith.cmpi ne, %32, %c0_i32_3 : i32
    scf.if %33 {
      %c1_i32_32 = arith.constant 1 : i32
      %c0_i32_33 = arith.constant 0 : i32
      %90 = tpu.memref_slice %arg3[%7, %c0_i32_33] : memref<5000x128xf32, #tpu.memory_space<any>> -> memref<1x128xf32, #tpu.memory_space<any>>
      %c1_i32_34 = arith.constant 1 : i32
      %c0_i32_35 = arith.constant 0 : i32
      %91 = tpu.memref_slice %arg4[%c1_i32_34, %c0_i32_35] : memref<8x128xf32, #tpu.memory_space<vmem>> -> memref<1x128xf32, #tpu.memory_space<vmem>>
      %92 = tpu.memref_slice %arg5[%c1_i32_32] : memref<8x!tpu.dma_semaphore, #tpu.memory_space<semaphore_mem>> -> memref<1x!tpu.dma_semaphore, #tpu.memory_space<semaphore_mem>>
      %93 = tpu.memref_squeeze %92 : memref<1x!tpu.dma_semaphore, #tpu.memory_space<semaphore_mem>> -> memref<!tpu.dma_semaphore, #tpu.memory_space<semaphore_mem>>
      tpu.enqueue_dma source(%90 : memref<1x128xf32, #tpu.memory_space<any>>) target(%91 : memref<1x128xf32, #tpu.memory_space<vmem>>) target_semaphore(%93 : memref<!tpu.dma_semaphore, #tpu.memory_space<semaphore_mem>>)
    } else {
    }
    %c2_i32_4 = arith.constant 2 : i32
    %34 = arith.addi %0, %c2_i32_4 : i32
    %35 = arith.cmpi slt, %34, %1 : i32
    %36 = arith.extui %35 : i1 to i32
    %c0_i32_5 = arith.constant 0 : i32
    %37 = arith.cmpi ne, %36, %c0_i32_5 : i32
    scf.if %37 {
      %c2_i32_32 = arith.constant 2 : i32
      %c0_i32_33 = arith.constant 0 : i32
      %90 = tpu.memref_slice %arg3[%10, %c0_i32_33] : memref<5000x128xf32, #tpu.memory_space<any>> -> memref<1x128xf32, #tpu.memory_space<any>>
      %c2_i32_34 = arith.constant 2 : i32
      %c0_i32_35 = arith.constant 0 : i32
      %91 = tpu.memref_slice %arg4[%c2_i32_34, %c0_i32_35] : memref<8x128xf32, #tpu.memory_space<vmem>> -> memref<1x128xf32, #tpu.memory_space<vmem>>
      %92 = tpu.memref_slice %arg5[%c2_i32_32] : memref<8x!tpu.dma_semaphore, #tpu.memory_space<semaphore_mem>> -> memref<1x!tpu.dma_semaphore, #tpu.memory_space<semaphore_mem>>
      %93 = tpu.memref_squeeze %92 : memref<1x!tpu.dma_semaphore, #tpu.memory_space<semaphore_mem>> -> memref<!tpu.dma_semaphore, #tpu.memory_space<semaphore_mem>>
      tpu.enqueue_dma source(%90 : memref<1x128xf32, #tpu.memory_space<any>>) target(%91 : memref<1x128xf32, #tpu.memory_space<vmem>>) target_semaphore(%93 : memref<!tpu.dma_semaphore, #tpu.memory_space<semaphore_mem>>)
    } else {
    }
    %c3_i32_6 = arith.constant 3 : i32
    %38 = arith.addi %0, %c3_i32_6 : i32
    %39 = arith.cmpi slt, %38, %1 : i32
    %40 = arith.extui %39 : i1 to i32
    %c0_i32_7 = arith.constant 0 : i32
    %41 = arith.cmpi ne, %40, %c0_i32_7 : i32
    scf.if %41 {
      %c3_i32_32 = arith.constant 3 : i32
      %c0_i32_33 = arith.constant 0 : i32
      %90 = tpu.memref_slice %arg3[%13, %c0_i32_33] : memref<5000x128xf32, #tpu.memory_space<any>> -> memref<1x128xf32, #tpu.memory_space<any>>
      %c3_i32_34 = arith.constant 3 : i32
      %c0_i32_35 = arith.constant 0 : i32
      %91 = tpu.memref_slice %arg4[%c3_i32_34, %c0_i32_35] : memref<8x128xf32, #tpu.memory_space<vmem>> -> memref<1x128xf32, #tpu.memory_space<vmem>>
      %92 = tpu.memref_slice %arg5[%c3_i32_32] : memref<8x!tpu.dma_semaphore, #tpu.memory_space<semaphore_mem>> -> memref<1x!tpu.dma_semaphore, #tpu.memory_space<semaphore_mem>>
      %93 = tpu.memref_squeeze %92 : memref<1x!tpu.dma_semaphore, #tpu.memory_space<semaphore_mem>> -> memref<!tpu.dma_semaphore, #tpu.memory_space<semaphore_mem>>
      tpu.enqueue_dma source(%90 : memref<1x128xf32, #tpu.memory_space<any>>) target(%91 : memref<1x128xf32, #tpu.memory_space<vmem>>) target_semaphore(%93 : memref<!tpu.dma_semaphore, #tpu.memory_space<semaphore_mem>>)
    } else {
    }
    %c4_i32_8 = arith.constant 4 : i32
    %42 = arith.addi %0, %c4_i32_8 : i32
    %43 = arith.cmpi slt, %42, %1 : i32
    %44 = arith.extui %43 : i1 to i32
    %c0_i32_9 = arith.constant 0 : i32
    %45 = arith.cmpi ne, %44, %c0_i32_9 : i32
    scf.if %45 {
      %c4_i32_32 = arith.constant 4 : i32
      %c0_i32_33 = arith.constant 0 : i32
      %90 = tpu.memref_slice %arg3[%16, %c0_i32_33] : memref<5000x128xf32, #tpu.memory_space<any>> -> memref<1x128xf32, #tpu.memory_space<any>>
      %c4_i32_34 = arith.constant 4 : i32
      %c0_i32_35 = arith.constant 0 : i32
      %91 = tpu.memref_slice %arg4[%c4_i32_34, %c0_i32_35] : memref<8x128xf32, #tpu.memory_space<vmem>> -> memref<1x128xf32, #tpu.memory_space<vmem>>
      %92 = tpu.memref_slice %arg5[%c4_i32_32] : memref<8x!tpu.dma_semaphore, #tpu.memory_space<semaphore_mem>> -> memref<1x!tpu.dma_semaphore, #tpu.memory_space<semaphore_mem>>
      %93 = tpu.memref_squeeze %92 : memref<1x!tpu.dma_semaphore, #tpu.memory_space<semaphore_mem>> -> memref<!tpu.dma_semaphore, #tpu.memory_space<semaphore_mem>>
      tpu.enqueue_dma source(%90 : memref<1x128xf32, #tpu.memory_space<any>>) target(%91 : memref<1x128xf32, #tpu.memory_space<vmem>>) target_semaphore(%93 : memref<!tpu.dma_semaphore, #tpu.memory_space<semaphore_mem>>)
    } else {
    }
    %c5_i32_10 = arith.constant 5 : i32
    %46 = arith.addi %0, %c5_i32_10 : i32
    %47 = arith.cmpi slt, %46, %1 : i32
    %48 = arith.extui %47 : i1 to i32
    %c0_i32_11 = arith.constant 0 : i32
    %49 = arith.cmpi ne, %48, %c0_i32_11 : i32
    scf.if %49 {
      %c5_i32_32 = arith.constant 5 : i32
      %c0_i32_33 = arith.constant 0 : i32
      %90 = tpu.memref_slice %arg3[%19, %c0_i32_33] : memref<5000x128xf32, #tpu.memory_space<any>> -> memref<1x128xf32, #tpu.memory_space<any>>
      %c5_i32_34 = arith.constant 5 : i32
      %c0_i32_35 = arith.constant 0 : i32
      %91 = tpu.memref_slice %arg4[%c5_i32_34, %c0_i32_35] : memref<8x128xf32, #tpu.memory_space<vmem>> -> memref<1x128xf32, #tpu.memory_space<vmem>>
      %92 = tpu.memref_slice %arg5[%c5_i32_32] : memref<8x!tpu.dma_semaphore, #tpu.memory_space<semaphore_mem>> -> memref<1x!tpu.dma_semaphore, #tpu.memory_space<semaphore_mem>>
      %93 = tpu.memref_squeeze %92 : memref<1x!tpu.dma_semaphore, #tpu.memory_space<semaphore_mem>> -> memref<!tpu.dma_semaphore, #tpu.memory_space<semaphore_mem>>
      tpu.enqueue_dma source(%90 : memref<1x128xf32, #tpu.memory_space<any>>) target(%91 : memref<1x128xf32, #tpu.memory_space<vmem>>) target_semaphore(%93 : memref<!tpu.dma_semaphore, #tpu.memory_space<semaphore_mem>>)
    } else {
    }
    %c6_i32_12 = arith.constant 6 : i32
    %50 = arith.addi %0, %c6_i32_12 : i32
    %51 = arith.cmpi slt, %50, %1 : i32
    %52 = arith.extui %51 : i1 to i32
    %c0_i32_13 = arith.constant 0 : i32
    %53 = arith.cmpi ne, %52, %c0_i32_13 : i32
    scf.if %53 {
      %c6_i32_32 = arith.constant 6 : i32
      %c0_i32_33 = arith.constant 0 : i32
      %90 = tpu.memref_slice %arg3[%22, %c0_i32_33] : memref<5000x128xf32, #tpu.memory_space<any>> -> memref<1x128xf32, #tpu.memory_space<any>>
      %c6_i32_34 = arith.constant 6 : i32
      %c0_i32_35 = arith.constant 0 : i32
      %91 = tpu.memref_slice %arg4[%c6_i32_34, %c0_i32_35] : memref<8x128xf32, #tpu.memory_space<vmem>> -> memref<1x128xf32, #tpu.memory_space<vmem>>
      %92 = tpu.memref_slice %arg5[%c6_i32_32] : memref<8x!tpu.dma_semaphore, #tpu.memory_space<semaphore_mem>> -> memref<1x!tpu.dma_semaphore, #tpu.memory_space<semaphore_mem>>
      %93 = tpu.memref_squeeze %92 : memref<1x!tpu.dma_semaphore, #tpu.memory_space<semaphore_mem>> -> memref<!tpu.dma_semaphore, #tpu.memory_space<semaphore_mem>>
      tpu.enqueue_dma source(%90 : memref<1x128xf32, #tpu.memory_space<any>>) target(%91 : memref<1x128xf32, #tpu.memory_space<vmem>>) target_semaphore(%93 : memref<!tpu.dma_semaphore, #tpu.memory_space<semaphore_mem>>)
    } else {
    }
    %c7_i32_14 = arith.constant 7 : i32
    %54 = arith.addi %0, %c7_i32_14 : i32
    %55 = arith.cmpi slt, %54, %1 : i32
    %56 = arith.extui %55 : i1 to i32
    %c0_i32_15 = arith.constant 0 : i32
    %57 = arith.cmpi ne, %56, %c0_i32_15 : i32
    scf.if %57 {
      %c7_i32_32 = arith.constant 7 : i32
      %c0_i32_33 = arith.constant 0 : i32
      %90 = tpu.memref_slice %arg3[%25, %c0_i32_33] : memref<5000x128xf32, #tpu.memory_space<any>> -> memref<1x128xf32, #tpu.memory_space<any>>
      %c7_i32_34 = arith.constant 7 : i32
      %c0_i32_35 = arith.constant 0 : i32
      %91 = tpu.memref_slice %arg4[%c7_i32_34, %c0_i32_35] : memref<8x128xf32, #tpu.memory_space<vmem>> -> memref<1x128xf32, #tpu.memory_space<vmem>>
      %92 = tpu.memref_slice %arg5[%c7_i32_32] : memref<8x!tpu.dma_semaphore, #tpu.memory_space<semaphore_mem>> -> memref<1x!tpu.dma_semaphore, #tpu.memory_space<semaphore_mem>>
      %93 = tpu.memref_squeeze %92 : memref<1x!tpu.dma_semaphore, #tpu.memory_space<semaphore_mem>> -> memref<!tpu.dma_semaphore, #tpu.memory_space<semaphore_mem>>
      tpu.enqueue_dma source(%90 : memref<1x128xf32, #tpu.memory_space<any>>) target(%91 : memref<1x128xf32, #tpu.memory_space<vmem>>) target_semaphore(%93 : memref<!tpu.dma_semaphore, #tpu.memory_space<semaphore_mem>>)
    } else {
    }
    %c0_i32_16 = arith.constant 0 : i32
    %58 = arith.addi %0, %c0_i32_16 : i32
    %59 = arith.cmpi slt, %58, %1 : i32
    %60 = arith.extui %59 : i1 to i32
    %c0_i32_17 = arith.constant 0 : i32
    %61 = arith.cmpi ne, %60, %c0_i32_17 : i32
    scf.if %61 {
      %c0_i32_32 = arith.constant 0 : i32
      %c0_i32_33 = arith.constant 0 : i32
      %90 = tpu.memref_slice %arg3[%4, %c0_i32_33] : memref<5000x128xf32, #tpu.memory_space<any>> -> memref<1x128xf32, #tpu.memory_space<any>>
      %c0_i32_34 = arith.constant 0 : i32
      %c0_i32_35 = arith.constant 0 : i32
      %91 = tpu.memref_slice %arg4[%c0_i32_34, %c0_i32_35] : memref<8x128xf32, #tpu.memory_space<vmem>> -> memref<1x128xf32, #tpu.memory_space<vmem>>
      %92 = tpu.memref_slice %arg5[%c0_i32_32] : memref<8x!tpu.dma_semaphore, #tpu.memory_space<semaphore_mem>> -> memref<1x!tpu.dma_semaphore, #tpu.memory_space<semaphore_mem>>
      %93 = tpu.memref_squeeze %92 : memref<1x!tpu.dma_semaphore, #tpu.memory_space<semaphore_mem>> -> memref<!tpu.dma_semaphore, #tpu.memory_space<semaphore_mem>>
      tpu.wait_dma2 semaphore(%93 : memref<!tpu.dma_semaphore, #tpu.memory_space<semaphore_mem>>) src(%90 : memref<1x128xf32, #tpu.memory_space<any>>) dst(%91 : memref<1x128xf32, #tpu.memory_space<vmem>>)
    } else {
    }
    %c1_i32_18 = arith.constant 1 : i32
    %62 = arith.addi %0, %c1_i32_18 : i32
    %63 = arith.cmpi slt, %62, %1 : i32
    %64 = arith.extui %63 : i1 to i32
    %c0_i32_19 = arith.constant 0 : i32
    %65 = arith.cmpi ne, %64, %c0_i32_19 : i32
    scf.if %65 {
      %c1_i32_32 = arith.constant 1 : i32
      %c0_i32_33 = arith.constant 0 : i32
      %90 = tpu.memref_slice %arg3[%7, %c0_i32_33] : memref<5000x128xf32, #tpu.memory_space<any>> -> memref<1x128xf32, #tpu.memory_space<any>>
      %c1_i32_34 = arith.constant 1 : i32
      %c0_i32_35 = arith.constant 0 : i32
      %91 = tpu.memref_slice %arg4[%c1_i32_34, %c0_i32_35] : memref<8x128xf32, #tpu.memory_space<vmem>> -> memref<1x128xf32, #tpu.memory_space<vmem>>
      %92 = tpu.memref_slice %arg5[%c1_i32_32] : memref<8x!tpu.dma_semaphore, #tpu.memory_space<semaphore_mem>> -> memref<1x!tpu.dma_semaphore, #tpu.memory_space<semaphore_mem>>
      %93 = tpu.memref_squeeze %92 : memref<1x!tpu.dma_semaphore, #tpu.memory_space<semaphore_mem>> -> memref<!tpu.dma_semaphore, #tpu.memory_space<semaphore_mem>>
      tpu.wait_dma2 semaphore(%93 : memref<!tpu.dma_semaphore, #tpu.memory_space<semaphore_mem>>) src(%90 : memref<1x128xf32, #tpu.memory_space<any>>) dst(%91 : memref<1x128xf32, #tpu.memory_space<vmem>>)
    } else {
    }
    %c2_i32_20 = arith.constant 2 : i32
    %66 = arith.addi %0, %c2_i32_20 : i32
    %67 = arith.cmpi slt, %66, %1 : i32
    %68 = arith.extui %67 : i1 to i32
    %c0_i32_21 = arith.constant 0 : i32
    %69 = arith.cmpi ne, %68, %c0_i32_21 : i32
    scf.if %69 {
      %c2_i32_32 = arith.constant 2 : i32
      %c0_i32_33 = arith.constant 0 : i32
      %90 = tpu.memref_slice %arg3[%10, %c0_i32_33] : memref<5000x128xf32, #tpu.memory_space<any>> -> memref<1x128xf32, #tpu.memory_space<any>>
      %c2_i32_34 = arith.constant 2 : i32
      %c0_i32_35 = arith.constant 0 : i32
      %91 = tpu.memref_slice %arg4[%c2_i32_34, %c0_i32_35] : memref<8x128xf32, #tpu.memory_space<vmem>> -> memref<1x128xf32, #tpu.memory_space<vmem>>
      %92 = tpu.memref_slice %arg5[%c2_i32_32] : memref<8x!tpu.dma_semaphore, #tpu.memory_space<semaphore_mem>> -> memref<1x!tpu.dma_semaphore, #tpu.memory_space<semaphore_mem>>
      %93 = tpu.memref_squeeze %92 : memref<1x!tpu.dma_semaphore, #tpu.memory_space<semaphore_mem>> -> memref<!tpu.dma_semaphore, #tpu.memory_space<semaphore_mem>>
      tpu.wait_dma2 semaphore(%93 : memref<!tpu.dma_semaphore, #tpu.memory_space<semaphore_mem>>) src(%90 : memref<1x128xf32, #tpu.memory_space<any>>) dst(%91 : memref<1x128xf32, #tpu.memory_space<vmem>>)
    } else {
    }
    %c3_i32_22 = arith.constant 3 : i32
    %70 = arith.addi %0, %c3_i32_22 : i32
    %71 = arith.cmpi slt, %70, %1 : i32
    %72 = arith.extui %71 : i1 to i32
    %c0_i32_23 = arith.constant 0 : i32
    %73 = arith.cmpi ne, %72, %c0_i32_23 : i32
    scf.if %73 {
      %c3_i32_32 = arith.constant 3 : i32
      %c0_i32_33 = arith.constant 0 : i32
      %90 = tpu.memref_slice %arg3[%13, %c0_i32_33] : memref<5000x128xf32, #tpu.memory_space<any>> -> memref<1x128xf32, #tpu.memory_space<any>>
      %c3_i32_34 = arith.constant 3 : i32
      %c0_i32_35 = arith.constant 0 : i32
      %91 = tpu.memref_slice %arg4[%c3_i32_34, %c0_i32_35] : memref<8x128xf32, #tpu.memory_space<vmem>> -> memref<1x128xf32, #tpu.memory_space<vmem>>
      %92 = tpu.memref_slice %arg5[%c3_i32_32] : memref<8x!tpu.dma_semaphore, #tpu.memory_space<semaphore_mem>> -> memref<1x!tpu.dma_semaphore, #tpu.memory_space<semaphore_mem>>
      %93 = tpu.memref_squeeze %92 : memref<1x!tpu.dma_semaphore, #tpu.memory_space<semaphore_mem>> -> memref<!tpu.dma_semaphore, #tpu.memory_space<semaphore_mem>>
      tpu.wait_dma2 semaphore(%93 : memref<!tpu.dma_semaphore, #tpu.memory_space<semaphore_mem>>) src(%90 : memref<1x128xf32, #tpu.memory_space<any>>) dst(%91 : memref<1x128xf32, #tpu.memory_space<vmem>>)
    } else {
    }
    %c4_i32_24 = arith.constant 4 : i32
    %74 = arith.addi %0, %c4_i32_24 : i32
    %75 = arith.cmpi slt, %74, %1 : i32
    %76 = arith.extui %75 : i1 to i32
    %c0_i32_25 = arith.constant 0 : i32
    %77 = arith.cmpi ne, %76, %c0_i32_25 : i32
    scf.if %77 {
      %c4_i32_32 = arith.constant 4 : i32
      %c0_i32_33 = arith.constant 0 : i32
      %90 = tpu.memref_slice %arg3[%16, %c0_i32_33] : memref<5000x128xf32, #tpu.memory_space<any>> -> memref<1x128xf32, #tpu.memory_space<any>>
      %c4_i32_34 = arith.constant 4 : i32
      %c0_i32_35 = arith.constant 0 : i32
      %91 = tpu.memref_slice %arg4[%c4_i32_34, %c0_i32_35] : memref<8x128xf32, #tpu.memory_space<vmem>> -> memref<1x128xf32, #tpu.memory_space<vmem>>
      %92 = tpu.memref_slice %arg5[%c4_i32_32] : memref<8x!tpu.dma_semaphore, #tpu.memory_space<semaphore_mem>> -> memref<1x!tpu.dma_semaphore, #tpu.memory_space<semaphore_mem>>
      %93 = tpu.memref_squeeze %92 : memref<1x!tpu.dma_semaphore, #tpu.memory_space<semaphore_mem>> -> memref<!tpu.dma_semaphore, #tpu.memory_space<semaphore_mem>>
      tpu.wait_dma2 semaphore(%93 : memref<!tpu.dma_semaphore, #tpu.memory_space<semaphore_mem>>) src(%90 : memref<1x128xf32, #tpu.memory_space<any>>) dst(%91 : memref<1x128xf32, #tpu.memory_space<vmem>>)
    } else {
    }
    %c5_i32_26 = arith.constant 5 : i32
    %78 = arith.addi %0, %c5_i32_26 : i32
    %79 = arith.cmpi slt, %78, %1 : i32
    %80 = arith.extui %79 : i1 to i32
    %c0_i32_27 = arith.constant 0 : i32
    %81 = arith.cmpi ne, %80, %c0_i32_27 : i32
    scf.if %81 {
      %c5_i32_32 = arith.constant 5 : i32
      %c0_i32_33 = arith.constant 0 : i32
      %90 = tpu.memref_slice %arg3[%19, %c0_i32_33] : memref<5000x128xf32, #tpu.memory_space<any>> -> memref<1x128xf32, #tpu.memory_space<any>>
      %c5_i32_34 = arith.constant 5 : i32
      %c0_i32_35 = arith.constant 0 : i32
      %91 = tpu.memref_slice %arg4[%c5_i32_34, %c0_i32_35] : memref<8x128xf32, #tpu.memory_space<vmem>> -> memref<1x128xf32, #tpu.memory_space<vmem>>
      %92 = tpu.memref_slice %arg5[%c5_i32_32] : memref<8x!tpu.dma_semaphore, #tpu.memory_space<semaphore_mem>> -> memref<1x!tpu.dma_semaphore, #tpu.memory_space<semaphore_mem>>
      %93 = tpu.memref_squeeze %92 : memref<1x!tpu.dma_semaphore, #tpu.memory_space<semaphore_mem>> -> memref<!tpu.dma_semaphore, #tpu.memory_space<semaphore_mem>>
      tpu.wait_dma2 semaphore(%93 : memref<!tpu.dma_semaphore, #tpu.memory_space<semaphore_mem>>) src(%90 : memref<1x128xf32, #tpu.memory_space<any>>) dst(%91 : memref<1x128xf32, #tpu.memory_space<vmem>>)
    } else {
    }
    %c6_i32_28 = arith.constant 6 : i32
    %82 = arith.addi %0, %c6_i32_28 : i32
    %83 = arith.cmpi slt, %82, %1 : i32
    %84 = arith.extui %83 : i1 to i32
    %c0_i32_29 = arith.constant 0 : i32
    %85 = arith.cmpi ne, %84, %c0_i32_29 : i32
    scf.if %85 {
      %c6_i32_32 = arith.constant 6 : i32
      %c0_i32_33 = arith.constant 0 : i32
      %90 = tpu.memref_slice %arg3[%22, %c0_i32_33] : memref<5000x128xf32, #tpu.memory_space<any>> -> memref<1x128xf32, #tpu.memory_space<any>>
      %c6_i32_34 = arith.constant 6 : i32
      %c0_i32_35 = arith.constant 0 : i32
      %91 = tpu.memref_slice %arg4[%c6_i32_34, %c0_i32_35] : memref<8x128xf32, #tpu.memory_space<vmem>> -> memref<1x128xf32, #tpu.memory_space<vmem>>
      %92 = tpu.memref_slice %arg5[%c6_i32_32] : memref<8x!tpu.dma_semaphore, #tpu.memory_space<semaphore_mem>> -> memref<1x!tpu.dma_semaphore, #tpu.memory_space<semaphore_mem>>
      %93 = tpu.memref_squeeze %92 : memref<1x!tpu.dma_semaphore, #tpu.memory_space<semaphore_mem>> -> memref<!tpu.dma_semaphore, #tpu.memory_space<semaphore_mem>>
      tpu.wait_dma2 semaphore(%93 : memref<!tpu.dma_semaphore, #tpu.memory_space<semaphore_mem>>) src(%90 : memref<1x128xf32, #tpu.memory_space<any>>) dst(%91 : memref<1x128xf32, #tpu.memory_space<vmem>>)
    } else {
    }
    %c7_i32_30 = arith.constant 7 : i32
    %86 = arith.addi %0, %c7_i32_30 : i32
    %87 = arith.cmpi slt, %86, %1 : i32
    %88 = arith.extui %87 : i1 to i32
    %c0_i32_31 = arith.constant 0 : i32
    %89 = arith.cmpi ne, %88, %c0_i32_31 : i32
    scf.if %89 {
      %c7_i32_32 = arith.constant 7 : i32
      %c0_i32_33 = arith.constant 0 : i32
      %90 = tpu.memref_slice %arg3[%25, %c0_i32_33] : memref<5000x128xf32, #tpu.memory_space<any>> -> memref<1x128xf32, #tpu.memory_space<any>>
      %c7_i32_34 = arith.constant 7 : i32
      %c0_i32_35 = arith.constant 0 : i32
      %91 = tpu.memref_slice %arg4[%c7_i32_34, %c0_i32_35] : memref<8x128xf32, #tpu.memory_space<vmem>> -> memref<1x128xf32, #tpu.memory_space<vmem>>
      %92 = tpu.memref_slice %arg5[%c7_i32_32] : memref<8x!tpu.dma_semaphore, #tpu.memory_space<semaphore_mem>> -> memref<1x!tpu.dma_semaphore, #tpu.memory_space<semaphore_mem>>
      %93 = tpu.memref_squeeze %92 : memref<1x!tpu.dma_semaphore, #tpu.memory_space<semaphore_mem>> -> memref<!tpu.dma_semaphore, #tpu.memory_space<semaphore_mem>>
      tpu.wait_dma2 semaphore(%93 : memref<!tpu.dma_semaphore, #tpu.memory_space<semaphore_mem>>) src(%90 : memref<1x128xf32, #tpu.memory_space<any>>) dst(%91 : memref<1x128xf32, #tpu.memory_space<vmem>>)
    } else {
    }
    return
  }
  func.func @transform_1(%arg0: i32, %arg1: memref<8xi32, #tpu.memory_space<smem>>, %arg2: memref<1xi32, #tpu.memory_space<smem>>) -> (i32, i32) {
    %c0_i32 = arith.constant 0 : i32
    %c0_i32_0 = arith.constant 0 : i32
    return %arg0, %c0_i32 : i32, i32
  }
}

</mosaic_0001>

<bundles_post_ra>
// kernel: timestep_embedder.1
= control target key start
LH: loop header
LB: loop body
LE: loop exit
PB: predicated region body
PF: predicated region fallthrough
CT: control target
= control target key end

     0   :  { %s1079_s0 = inlined_call_operand.vmem [shape: s32[8], index: 0, kind: input, shape index: {}]   ;;  %s1080_s1 = inlined_call_operand.<no memory space> [shape: s32[1], index: 1, kind: input, shape index: {}]   ;;  %s1081_s2 = inlined_call_operand.hbm [shape: f32[5000,128], index: 2, kind: input, shape index: {}]   ;;  %s1082_s3 = inlined_call_operand.hbm [shape: f32[8,128], index: 3, kind: output, shape index: {}]  }
   0x1   :  { %s8_s14 = sshll.u32 %s1079_s0, 4  ;;  %s9_s14 = int_to_ptr.vmem [resolvable:$true] %s8_s14 }
   0x2   :  { %s427_s15 = scalar_lea.vmem %s9_s14, 16  ;;  %p432_p1 = scmp.lt.s32.totalorder %s9_s14, %s9_s14 }
   0x3   :  { %p428_p0 = scmp.ne.s32.totalorder %s9_s14, %s427_s15  ;;  %p433_p2 = scmp.lt.s32.totalorder %s427_s15, %s427_s15 }
   0x5   :  { %p434_p3 = por %p433_p2, %p432_p1 }
   0x7   :  { %p435_p4 = pnand %p434_p3, %p428_p0 }
   0x9   :  { %438 = shalt.err (!%p435_p4)  }
   0xa   :  { %s721_s16 = smov [#allocation4]  }
   0xb   :  { %11 = dma.vmem_to_smem %s9_s14, 16, %s721_s16, [#allocation3] }
   0xc   :  { %685 = dma.done.wait [#allocation3], 16 }
   0xd   :  { %686 = vsyncadd [#allocation3], 4294967280 }
   0xe   :  { %14 = sfence }
   0xf   :  { %15 = vsyncpa [#allocation7], 0  ;;  %s18_s17 = sld [smem:[#allocation4]]  ;;  %p1084_p5 = scmp.gt.s32.totalorder %s1080_s1, 0 }
  0x10   :  { %s722_s0 = smov [#allocation6]   ;;  %s756_s21 = sld [smem:[#allocation4 + $0x1]] }
  0x11   :  { %s46_s20 = sshll.u32 %s722_s0, 4  ;;  %p1085_p6 = scmp.gt.s32.totalorder %s1080_s1, 1  ;;  %s758_s20 = int_to_ptr.vmem [resolvable:$true] %s46_s20 }
  0x12   :  { %s723_s24 = smov [#allocation6 + $0x1]   ;;  %s763_s26 = sld [smem:[#allocation4 + $0x2]] }
  0x13   :  { %s65_s25 = sshll.u32 %s723_s24, 4  ;;  %s777_s9 = scalar_lea.hbm %s1081_s2, 80000  ;;  %s765_s25 = int_to_ptr.vmem [resolvable:$true] %s65_s25 }
  0x15   :  { %s332_s27 = sshll.u32 %s18_s17, 4 }
  0x16   :  { %s38_s30 = scalar_lea.hbm %s1081_s2, %s332_s27 }
  0x17   :  { %s439_s4 = scalar_lea.hbm %s38_s30, 16  ;;  %p444_p10 = scmp.lt.u32.totalorder %s38_s30, %s1081_s2 }
  0x18   :  { %p440_p7 = scmp.ne.s32.totalorder %s38_s30, %s439_s4  ;;  %p445_p11 = scmp.lt.u32.totalorder %s777_s9, %s439_s4 }
  0x19   :  { %p447_p13 = scmp.lt.u32.totalorder %s439_s4, %s38_s30 }
  0x1a   :  { %p441_p8 = pnand %p440_p7, %p1084_p5  ;;  %p446_p12 = por %p445_p11, %p444_p10 }
  0x1c   :  { %p442_p9 = pneg %p441_p8  ;;  %p448_p0 = por %p447_p13, %p446_p12 }
  0x1e   :  { %p449_p1 = pnand %p448_p0, %p442_p9 }
  0x20   :  { %452 = shalt.err (!%p449_p1)  }
  0x21   :  { %s453_s12 = scalar_lea.vmem %s758_s20, 16  ;;  %s790_s15 = scalar_lea.vmem %s758_s20, 128 }
  0x22   :  { %p454_p2 = scmp.ne.s32.totalorder %s758_s20, %s453_s12  ;;  %p1083_p7 = scmp.lt.s32.totalorder %s758_s20, %s758_s20 }
  0x23   :  { %p461_p8 = scmp.lt.s32.totalorder %s790_s15, %s453_s12 }
  0x24   :  { %p455_p3 = pnand %p454_p2, %p1084_p5 }
  0x25   :  { %p462_p9 = por %p461_p8, %p1083_p7 }
  0x26   :  { %p456_p4 = pneg %p455_p3 }
  0x28   :  { %p463_p10 = pnand %p462_p9, %p456_p4 }
  0x2a   :  { %466 = shalt.err (!%p463_p10)  }
  0x2b   :  { %371 = dma.hbm_to_vmem [thread:$0]  (%p1084_p5), %s38_s30, 16, %s758_s20, [#allocation2] }
  0x2c   :  { %s335_s18 = sshll.u32 %s756_s21, 4  ;;  %p1086_p11 = scmp.gt.s32.totalorder %s1080_s1, 2 }
  0x2d   :  { %s55_s24 = scalar_lea.hbm %s1081_s2, %s335_s18 }
  0x2e   :  { %s467_s27 = scalar_lea.hbm %s55_s24, 16  ;;  %p472_p1 = scmp.lt.u32.totalorder %s55_s24, %s1081_s2 }
  0x2f   :  { %p468_p12 = scmp.ne.s32.totalorder %s55_s24, %s467_s27  ;;  %p473_p2 = scmp.lt.u32.totalorder %s777_s9, %s467_s27 }
  0x30   :  { %p475_p4 = scmp.lt.u32.totalorder %s467_s27, %s55_s24 }
  0x31   :  { %p469_p13 = pnand %p468_p12, %p1085_p6  ;;  %p474_p3 = por %p473_p2, %p472_p1 }
  0x33   :  { %p470_p0 = pneg %p469_p13  ;;  %p476_p8 = por %p475_p4, %p474_p3 }
  0x35   :  { %p477_p9 = pnand %p476_p8, %p470_p0 }
  0x37   :  { %480 = shalt.err (!%p477_p9)  }
  0x38   :  { %s481_s21 = scalar_lea.vmem %s765_s25, 16  ;;  %p488_p7 = scmp.lt.s32.totalorder %s765_s25, %s758_s20 }
  0x39   :  { %p482_p10 = scmp.ne.s32.totalorder %s765_s25, %s481_s21  ;;  %p489_p5 = scmp.lt.s32.totalorder %s790_s15, %s481_s21 }
  0x3b   :  { %p483_p12 = pnand %p482_p10, %p1085_p6  ;;  %p490_p1 = por %p489_p5, %p488_p7 }
  0x3d   :  { %p484_p13 = pneg %p483_p12 }
  0x3f   :  { %p491_p2 = pnand %p490_p1, %p484_p13 }
  0x41   :  { %494 = shalt.err (!%p491_p2)  }
  0x42   :  { %373 = dma.hbm_to_vmem [thread:$0]  (%p1085_p6), %s55_s24, 16, %s765_s25, [#allocation2 + $0x1] }
  0x43   :  { %s338_s10 = sshll.u32 %s763_s26, 4  ;;  %s724_s11 = smov [#allocation6 + $0x2]  }
  0x44   :  { %s84_s12 = sshll.u32 %s724_s11, 4  ;;  %s74_s16 = scalar_lea.hbm %s1081_s2, %s338_s10  ;;  %s85_s12 = int_to_ptr.vmem [resolvable:$true] %s84_s12 }
  0x45   :  { %s495_s17 = scalar_lea.hbm %s74_s16, 16  ;;  %p500_p3 = scmp.lt.u32.totalorder %s74_s16, %s1081_s2 }
  0x46   :  { %p496_p5 = scmp.ne.s32.totalorder %s74_s16, %s495_s17  ;;  %p501_p4 = scmp.lt.u32.totalorder %s777_s9, %s495_s17 }
  0x47   :  { %p503_p9 = scmp.lt.u32.totalorder %s495_s17, %s74_s16 }
  0x48   :  { %p497_p7 = pnand %p496_p5, %p1086_p11  ;;  %p502_p8 = por %p501_p4, %p500_p3 }
  0x4a   :  { %p498_p0 = pneg %p497_p7  ;;  %p504_p10 = por %p503_p9, %p502_p8 }
  0x4c   :  { %p505_p12 = pnand %p504_p10, %p498_p0 }
  0x4e   :  { %508 = shalt.err (!%p505_p12)  }
  0x4f   :  { %s509_s25 = scalar_lea.vmem %s85_s12, 16  ;;  %p516_p5 = scmp.lt.s32.totalorder %s85_s12, %s758_s20 }
  0x50   :  { %p510_p13 = scmp.ne.s32.totalorder %s85_s12, %s509_s25  ;;  %p517_p7 = scmp.lt.s32.totalorder %s790_s15, %s509_s25 }
  0x52   :  { %p511_p1 = pnand %p510_p13, %p1086_p11  ;;  %p518_p6 = por %p517_p7, %p516_p5 }
  0x54   :  { %p512_p2 = pneg %p511_p1 }
  0x56   :  { %p519_p3 = pnand %p518_p6, %p512_p2 }
  0x58   :  { %522 = shalt.err (!%p519_p3)  }
  0x59   :  { %375 = dma.hbm_to_vmem [thread:$0]  (%p1086_p11), %s74_s16, 16, %s85_s12, [#allocation2 + $0x2] }
  0x5a   :  { %s325_s28 = sld [smem:[#allocation4 + $0x3]]  ;;  %p1087_p0 = scmp.gt.s32.totalorder %s1080_s1, 3 }
  0x5b   :  { %s725_s5 = smov [#allocation6 + $0x3]   ;;  %s857_s30 = sld [smem:[#allocation4 + $0x4]] }
  0x5c   :  { %s103_s21 = sshll.u32 %s725_s5, 4  ;;  %s726_s8 = smov [#allocation6 + $0x4]   ;;  %s104_s21 = int_to_ptr.vmem [resolvable:$true] %s103_s21 }
  0x5d   :  { %s122_s10 = sshll.u32 %s726_s8, 4  ;;  %s862_s11 = sld [smem:[#allocation4 + $0x5]]  ;;  %s864_s10 = int_to_ptr.vmem [resolvable:$true] %s122_s10 }
  0x60   :  { %s341_s12 = sshll.u32 %s325_s28, 4 }
  0x61   :  { %s93_s16 = scalar_lea.hbm %s1081_s2, %s341_s12 }
  0x62   :  { %s523_s17 = scalar_lea.hbm %s93_s16, 16  ;;  %p528_p10 = scmp.lt.u32.totalorder %s93_s16, %s1081_s2 }
  0x63   :  { %p524_p4 = scmp.ne.s32.totalorder %s93_s16, %s523_s17  ;;  %p529_p12 = scmp.lt.u32.totalorder %s777_s9, %s523_s17 }
  0x64   :  { %p531_p1 = scmp.lt.u32.totalorder %s523_s17, %s93_s16 }
  0x65   :  { %p525_p8 = pnand %p524_p4, %p1087_p0  ;;  %p530_p13 = por %p529_p12, %p528_p10 }
  0x67   :  { %p526_p9 = pneg %p525_p8  ;;  %p532_p2 = por %p531_p1, %p530_p13 }
  0x69   :  { %p533_p5 = pnand %p532_p2, %p526_p9 }
  0x6b   :  { %536 = shalt.err (!%p533_p5)  }
  0x6c   :  { %s537_s25 = scalar_lea.vmem %s104_s21, 16  ;;  %p544_p8 = scmp.lt.s32.totalorder %s104_s21, %s758_s20 }
  0x6d   :  { %p538_p7 = scmp.ne.s32.totalorder %s104_s21, %s537_s25  ;;  %p545_p11 = scmp.lt.s32.totalorder %s790_s15, %s537_s25 }
  0x6f   :  { %p539_p3 = pnand %p538_p7, %p1087_p0  ;;  %p546_p6 = por %p545_p11, %p544_p8 }
  0x71   :  { %p540_p4 = pneg %p539_p3 }
  0x73   :  { %p547_p10 = pnand %p546_p6, %p540_p4 }
  0x75   :  { %550 = shalt.err (!%p547_p10)  }
  0x76   :  { %377 = dma.hbm_to_vmem [thread:$0]  (%p1087_p0), %s93_s16, 16, %s104_s21, [#allocation2 + $0x3] }
  0x77   :  { %s344_s28 = sshll.u32 %s857_s30, 4  ;;  %p1088_p9 = scmp.gt.s32.totalorder %s1080_s1, 5 }
  0x78   :  { %s112_s7 = scalar_lea.hbm %s1081_s2, %s344_s28  ;;  %p1089_p6 = scmp.gt.s32.totalorder %s1080_s1, 4 }
  0x79   :  { %s551_s8 = scalar_lea.hbm %s112_s7, 16  ;;  %p556_p1 = scmp.lt.u32.totalorder %s112_s7, %s1081_s2 }
  0x7a   :  { %p552_p11 = scmp.ne.s32.totalorder %s112_s7, %s551_s8  ;;  %p557_p2 = scmp.lt.u32.totalorder %s777_s9, %s551_s8 }
  0x7b   :  { %p559_p7 = scmp.lt.u32.totalorder %s551_s8, %s112_s7 }
  0x7c   :  { %p553_p12 = pnand %p552_p11, %p1089_p6  ;;  %p558_p5 = por %p557_p2, %p556_p1 }
  0x7e   :  { %p554_p13 = pneg %p553_p12  ;;  %p560_p3 = por %p559_p7, %p558_p5 }
  0x80   :  { %p561_p4 = pnand %p560_p3, %p554_p13 }
  0x82   :  { %564 = shalt.err (!%p561_p4)  }
  0x83   :  { %s565_s21 = scalar_lea.vmem %s864_s10, 16  ;;  %p1090_p10 = pmov %p1089_p6 }
  0x84   :  { %p566_p8 = scmp.ne.s32.totalorder %s864_s10, %s565_s21  ;;  %p572_p12 = scmp.lt.s32.totalorder %s864_s10, %s758_s20 }
  0x85   :  { %p573_p0 = scmp.lt.s32.totalorder %s790_s15, %s565_s21 }
  0x86   :  { %p567_p11 = pnand %p566_p8, %p1090_p10 }
  0x87   :  { %p574_p1 = por %p573_p0, %p572_p12 }
  0x88   :  { %p568_p6 = pneg %p567_p11 }
  0x8a   :  { %p575_p2 = pnand %p574_p1, %p568_p6 }
  0x8c   :  { %578 = shalt.err (!%p575_p2)  }
  0x8d   :  { %p1091_p13 = pmov %p1090_p10  ;;  %s347_s0 = sshll.u32 %s862_s11, 4 }
  0x8e   :  { %s727_s22 = smov [#allocation6 + $0x5]   ;;  %s131_s24 = scalar_lea.hbm %s1081_s2, %s347_s0 }
  0x8f   :  { %379 = dma.hbm_to_vmem [thread:$0]  (%p1091_p13), %s112_s7, 16, %s864_s10, [#allocation2 + $0x4] }
  0x90   :  { %s141_s25 = sshll.u32 %s727_s22, 4  ;;  %s579_s27 = scalar_lea.hbm %s131_s24, 16  ;;  %s142_s25 = int_to_ptr.vmem [resolvable:$true] %s141_s25 }
  0x91   :  { %p580_p0 = scmp.ne.s32.totalorder %s131_s24, %s579_s27  ;;  %p584_p3 = scmp.lt.u32.totalorder %s131_s24, %s1081_s2 }
  0x92   :  { %p585_p4 = scmp.lt.u32.totalorder %s777_s9, %s579_s27  ;;  %p587_p10 = scmp.lt.u32.totalorder %s579_s27, %s131_s24 }
  0x93   :  { %p581_p5 = pnand %p580_p0, %p1088_p9 }
  0x94   :  { %p586_p8 = por %p585_p4, %p584_p3 }
  0x95   :  { %p582_p7 = pneg %p581_p5 }
  0x96   :  { %p588_p11 = por %p587_p10, %p586_p8 }
  0x98   :  { %p589_p6 = pnand %p588_p11, %p582_p7 }
  0x9a   :  { %592 = shalt.err (!%p589_p6)  }
  0x9b   :  { %s593_s10 = scalar_lea.vmem %s142_s25, 16  ;;  %p600_p13 = scmp.lt.s32.totalorder %s142_s25, %s758_s20 }
  0x9c   :  { %p594_p12 = scmp.ne.s32.totalorder %s142_s25, %s593_s10  ;;  %p601_p0 = scmp.lt.s32.totalorder %s790_s15, %s593_s10 }
  0x9e   :  { %p595_p1 = pnand %p594_p12, %p1088_p9  ;;  %p602_p5 = por %p601_p0, %p600_p13 }
  0xa0   :  { %p596_p2 = pneg %p595_p1 }
  0xa2   :  { %p603_p3 = pnand %p602_p5, %p596_p2 }
  0xa4   :  { %606 = shalt.err (!%p603_p3)  }
  0xa5   :  { %381 = dma.hbm_to_vmem [thread:$0]  (%p1088_p9), %s131_s24, 16, %s142_s25, [#allocation2 + $0x5] }
  0xa6   :  { %s328_s12 = sld [smem:[#allocation4 + $0x6]]  ;;  %s728_s13 = smov [#allocation6 + $0x6]  }
  0xa7   :  { %s160_s14 = sshll.u32 %s728_s13, 4  ;;  %s938_s17 = sld [smem:[#allocation4 + $0x7]]  ;;  %s161_s14 = int_to_ptr.vmem [resolvable:$true] %s160_s14 }
  0xa8   :  { %p408_p7 = scmp.gt.s32.totalorder %s1080_s1, 6  ;;  %s729_s16 = smov [#allocation6 + $0x7]  }
  0xa9   :  { %s179_s18 = sshll.u32 %s729_s16, 4  ;;  %s949_s18 = int_to_ptr.vmem [resolvable:$true] %s179_s18 }
  0xac   :  { %s350_s19 = sshll.u32 %s328_s12, 4 }
  0xad   :  { %s150_s23 = scalar_lea.hbm %s1081_s2, %s350_s19 }
  0xae   :  { %s607_s24 = scalar_lea.hbm %s150_s23, 16  ;;  %p612_p6 = scmp.lt.u32.totalorder %s150_s23, %s1081_s2 }
  0xaf   :  { %p608_p8 = scmp.ne.s32.totalorder %s150_s23, %s607_s24  ;;  %p613_p12 = scmp.lt.u32.totalorder %s777_s9, %s607_s24 }
  0xb0   :  { %p615_p2 = scmp.lt.u32.totalorder %s607_s24, %s150_s23 }
  0xb1   :  { %p609_p10 = pnand %p608_p8, %p408_p7  ;;  %p614_p1 = por %p613_p12, %p612_p6 }
  0xb3   :  { %p610_p11 = pneg %p609_p10  ;;  %p616_p13 = por %p615_p2, %p614_p1 }
  0xb5   :  { %p617_p0 = pnand %p616_p13, %p610_p11 }
  0xb7   :  { %620 = shalt.err (!%p617_p0)  }
  0xb8   :  { %s621_s5 = scalar_lea.vmem %s161_s14, 16  ;;  %p628_p10 = scmp.lt.s32.totalorder %s161_s14, %s758_s20 }
  0xb9   :  { %p622_p5 = scmp.ne.s32.totalorder %s161_s14, %s621_s5  ;;  %p629_p9 = scmp.lt.s32.totalorder %s790_s15, %s621_s5 }
  0xbb   :  { %p623_p3 = pnand %p622_p5, %p408_p7  ;;  %p630_p4 = por %p629_p9, %p628_p10 }
  0xbd   :  { %p624_p8 = pneg %p623_p3 }
  0xbf   :  { %p631_p6 = pnand %p630_p4, %p624_p8 }
  0xc1   :  { %634 = shalt.err (!%p631_p6)  }
  0xc2   :  { %383 = dma.hbm_to_vmem [thread:$0]  (%p408_p7), %s150_s23, 16, %s161_s14, [#allocation2 + $0x6] }
  0xc3   :  { %s353_s8 = sshll.u32 %s938_s17, 4  ;;  %p1092_p9 = scmp.gt.s32.totalorder %s1080_s1, 7 }
  0xc4   :  { %s169_s21 = scalar_lea.hbm %s1081_s2, %s353_s8 }
  0xc5   :  { %s635_s30 = scalar_lea.hbm %s169_s21, 16  ;;  %p640_p1 = scmp.lt.u32.totalorder %s169_s21, %s1081_s2 }
  0xc6   :  { %p636_p11 = scmp.ne.s32.totalorder %s169_s21, %s635_s30  ;;  %p641_p2 = scmp.lt.u32.totalorder %s777_s9, %s635_s30 }
  0xc7   :  { %p643_p0 = scmp.lt.u32.totalorder %s635_s30, %s169_s21 }
  0xc8   :  { %p637_p4 = pnand %p636_p11, %p1092_p9  ;;  %p642_p13 = por %p641_p2, %p640_p1 }
  0xca   :  { %p638_p12 = pneg %p637_p4  ;;  %p644_p5 = por %p643_p0, %p642_p13 }
  0xcc   :  { %p645_p3 = pnand %p644_p5, %p638_p12 }
  0xce   :  { %648 = shalt.err (!%p645_p3)  }
  0xcf   :  { %s649_s14 = scalar_lea.vmem %s949_s18, 16  ;;  %p1093_p10 = pmov %p1092_p9 }
  0xd0   :  { %p650_p8 = scmp.ne.s32.totalorder %s949_s18, %s649_s14  ;;  %p656_p9 = scmp.lt.s32.totalorder %s949_s18, %s758_s20 }
  0xd1   :  { %p657_p4 = scmp.lt.s32.totalorder %s790_s15, %s649_s14 }
  0xd2   :  { %p651_p6 = pnand %p650_p8, %p1093_p10 }
  0xd3   :  { %p658_p1 = por %p657_p4, %p656_p9 }
  0xd4   :  { %p652_p11 = pneg %p651_p6 }
  0xd6   :  { %p659_p2 = pnand %p658_p1, %p652_p11 }
  0xd8   :  { %662 = shalt.err (!%p659_p2)  }
  0xd9   :  { %p1094_p12 = pmov %p1093_p10  ;;  %p1095_p13 = scmp.gt.s32.totalorder %s1080_s1, 0 }
  0xdb   :  { %385 = dma.hbm_to_vmem [thread:$0]  (%p1094_p12), %s169_s21, 16, %s949_s18, [#allocation2 + $0x7] }
  0xdc   :  { %688 = dma.done.wait (%p1095_p13), [#allocation2], 16  ;;  %p1096_p0 = pmov %p1095_p13 }
  0xdd   :  { %p1097_p5 = scmp.gt.s32.totalorder %s1080_s1, 1 }
  0xde   :  { %690 = vsyncadd (%p1096_p0), [#allocation2], 4294967280 }
  0xdf   :  { %692 = dma.done.wait (%p1097_p5), [#allocation2 + $0x1], 16  ;;  %p1098_p3 = pmov %p1097_p5 }
  0xe0   :  { %p1099_p8 = scmp.gt.s32.totalorder %s1080_s1, 2 }
  0xe1   :  { %694 = vsyncadd (%p1098_p3), [#allocation2 + $0x1], 4294967280 }
  0xe2   :  { %696 = dma.done.wait (%p1099_p8), [#allocation2 + $0x2], 16  ;;  %p1100_p10 = pmov %p1099_p8 }
  0xe3   :  { %p1101_p6 = scmp.gt.s32.totalorder %s1080_s1, 3 }
  0xe4   :  { %698 = vsyncadd (%p1100_p10), [#allocation2 + $0x2], 4294967280 }
  0xe5   :  { %700 = dma.done.wait (%p1101_p6), [#allocation2 + $0x3], 16  ;;  %p1102_p11 = pmov %p1101_p6 }
  0xe6   :  { %p1103_p9 = scmp.gt.s32.totalorder %s1080_s1, 4 }
  0xe7   :  { %702 = vsyncadd (%p1102_p11), [#allocation2 + $0x3], 4294967280 }
  0xe8   :  { %704 = dma.done.wait (%p1103_p9), [#allocation2 + $0x4], 16  ;;  %p1104_p4 = pmov %p1103_p9 }
  0xe9   :  { %p1105_p1 = scmp.gt.s32.totalorder %s1080_s1, 5 }
  0xea   :  { %706 = vsyncadd (%p1104_p4), [#allocation2 + $0x4], 4294967280 }
  0xeb   :  { %708 = dma.done.wait (%p1105_p1), [#allocation2 + $0x5], 16  ;;  %p1106_p2 = pmov %p1105_p1 }
  0xed   :  { %710 = vsyncadd (%p1106_p2), [#allocation2 + $0x5], 4294967280 }
  0xee   :  { %712 = dma.done.wait (%p408_p7), [#allocation2 + $0x6], 16 }
  0xef   :  { %714 = vsyncadd (%p408_p7), [#allocation2 + $0x6], 4294967280 }
  0xf0   :  { %716 = dma.done.wait (%p1094_p12), [#allocation2 + $0x7], 16  ;;  %p1107_p13 = pmov %p1094_p12 }
  0xf1   :  { %p664_p0 = scmp.ne.s32.totalorder %s758_s20, %s790_s15  ;;  %p669_p5 = scmp.lt.s32.totalorder %s790_s15, %s790_s15 }
  0xf2   :  { %718 = vsyncadd (%p1107_p13), [#allocation2 + $0x7], 4294967280  ;;  %p1108_p3 = scmp.lt.s32.totalorder %s758_s20, %s758_s20 }
  0xf4   :  { %p670_p7 = por %p669_p5, %p1108_p3 }
  0xf6   :  { %p671_p8 = pnand %p670_p7, %p664_p0 }
  0xf8   :  { %674 = shalt.err (!%p671_p8)
}
  0xf9   :  { %s675_s5 = scalar_lea.hbm %s1082_s3, 128 }
  0xfa   :  { %p676_p10 = scmp.ne.s32.totalorder %s1082_s3, %s675_s5  ;;  %p679_p6 = scmp.lt.u32.totalorder %s675_s5, %s1082_s3 }
  0xfc   :  { %p681_p11 = pnand %p679_p6, %p676_p10 }
  0xfe   :  { %684 = shalt.err (!%p681_p11)
}
  0xff   :  { %247 = dma.vmem_to_hbm [thread:$0]  %s758_s20, 128, %s1082_s3, [#allocation7]  }
 0x100   :  { %719 = dma.done.wait [#allocation7], 128  }
 0x101   :  { %720 = vsyncadd [#allocation7], 4294967168 }
 0x102   :  { %251 = vsyncpa [#allocation7], 1 }
 0x103   :  { %252 = vsyncmov [#allocation2] }
 0x106   :  { %s253_s7 = vpop.sfrf %252 }
 0x107   :  { %p362_p9 = scmp.ne.s32.totalorder %s253_s7, 0 }
 0x109   :  { %257 = shalt.err (%p362_p9)  }
 0x10a   :  { %259 = vsyncmov [#allocation2 + $0x1] }
 0x10d   :  { %s260_s8 = vpop.sfrf %259 }
 0x10e   :  { %p363_p4 = scmp.ne.s32.totalorder %s260_s8, 0 }
 0x110   :  { %264 = shalt.err (%p363_p4)  }
 0x111   :  { %266 = vsyncmov [#allocation2 + $0x2] }
 0x114   :  { %s267_s12 = vpop.sfrf %266 }
 0x115   :  { %p364_p1 = scmp.ne.s32.totalorder %s267_s12, 0 }
 0x117   :  { %271 = shalt.err (%p364_p1)  }
 0x118   :  { %273 = vsyncmov [#allocation2 + $0x3] }
 0x11b   :  { %s274_s13 = vpop.sfrf %273 }
 0x11c   :  { %p365_p2 = scmp.ne.s32.totalorder %s274_s13, 0 }
 0x11e   :  { %278 = shalt.err (%p365_p2)  }
 0x11f   :  { %280 = vsyncmov [#allocation2 + $0x4] }
 0x122   :  { %s281_s3 = vpop.sfrf %280 }
 0x123   :  { %p366_p12 = scmp.ne.s32.totalorder %s281_s3, 0 }
 0x125   :  { %285 = shalt.err (%p366_p12)  }
 0x126   :  { %287 = vsyncmov [#allocation2 + $0x5] }
 0x129   :  { %s288_s20 = vpop.sfrf %287 }
 0x12a   :  { %p367_p13 = scmp.ne.s32.totalorder %s288_s20, 0 }
 0x12c   :  { %292 = shalt.err (%p367_p13)  }
 0x12d   :  { %294 = vsyncmov [#allocation2 + $0x6] }
 0x130   :  { %s295_s21 = vpop.sfrf %294 }
 0x131   :  { %p368_p0 = scmp.ne.s32.totalorder %s295_s21, 0 }
 0x133   :  { %299 = shalt.err (%p368_p0)  }
 0x134   :  { %301 = vsyncmov [#allocation2 + $0x7] }
 0x137   :  { %s302_s30 = vpop.sfrf %301 }
 0x138   :  { %p369_p5 = scmp.ne.s32.totalorder %s302_s30, 0 }
 0x13a   :  { %306 = shalt.err (%p369_p5)  }

</bundles_post_ra>
